<compile_context>
chip_gen: v7x
topology: tpu7x:2x2x1
jax: 0.10.0
libtpu: 0.0.40
codegen_flags: <defaults>
</compile_context>

<pallas_src>
import numpy as np
import jax
import jax.numpy as jnp
from jax.experimental import pallas as pl
from jax.experimental.pallas import tpu as pltpu


def _sse_kernel(x_ref, w_ref, b_ref, o_ref):
    # x_ref: (1, C, TN)  one batch element, one spatial tile (channels-first)
    # w_ref: (C, C)      1x1-conv weight (out_ch, in_ch), resident in VMEM
    # b_ref: (C, 1)      conv bias in f32 (zeros if the conv had bias=False)
    # o_ref: (1, C, TN)
    x = x_ref[0]                                               # native dtype (C, TN)
    # MXU matmul in the input dtype (bf16-native on v6e/v7x), f32 accumulation.
    y = jnp.dot(w_ref[...], x, preferred_element_type=jnp.float32)   # (C, TN) f32
    y = y + b_ref[...]                                         # broadcast (C, 1)
    # sigmoid(y) = 0.5 * (tanh(y / 2) + 1): exact, single EUP op, no VALU divide.
    gate = 0.5 * (jnp.tanh(y * 0.5) + 1.0)                     # f32
    # Final gate multiply in the input dtype (bf16 multiply on bf16 inputs).
    o_ref[0] = (x * gate.astype(x.dtype)).astype(o_ref.dtype)


def _vmem_tile_budget_bytes() -> int:
    """Per-(C, TN)-buffer budget; double-buffered in/out tiles stay under the
    default scoped-VMEM limit on every generation (v5e's 16 MiB is tightest)."""
    try:
        kind = jax.devices()[0].device_kind.lower()
    except Exception:
        kind = ""
    if "v5" in kind:
        return 3 * 1024 * 1024
    return 4 * 1024 * 1024


def _pick_spatial_tile(n_padded: int, batch: int, c: int, itemsize: int) -> int:
    """Pick TN: a 128-multiple dividing n_padded.

    Largest tile under the VMEM budget, but small enough that the grid has at
    least ~8 total steps so the fully-"parallel" grid can be sharded across
    both TensorCores on v7x (irrelevant on single-TC v5e/v6e, harmless there).
    """
    assert n_padded % 128 == 0
    budget = _vmem_tile_budget_bytes()
    cap = max(128, (budget // max(1, c * itemsize)) // 128 * 128)
    min_tiles = -(-8 // max(1, batch))                     # ceil(8 / batch)
    target = max(128, (n_padded // min_tiles) // 128 * 128)
    tn = max(128, min(n_padded, cap, target))
    while n_padded % tn != 0:                              # 128 | n_padded -> terminates
        tn -= 128
    return tn


def sse_forward(x, weight, bias=None):
    """x: (B, C, *spatial);  weight: (C, C) (1x1-conv kernel squeezed);
    bias: (C,) or None (if get_conv_layer was built with bias=False)."""
    b, c = x.shape[0], x.shape[1]
    n = int(np.prod(x.shape[2:]))
    x_bcn = x.reshape(b, c, n)                             # pure reshape, channels-first

    # Pad N up to a 128-multiple: lane-dense tiles, unmasked vector stores,
    # and no single giant block for odd-sized 3D volumes. Padded lanes are
    # zeros, so x * gate there is zero and gets sliced off anyway.
    pad = (-n) % 128
    if pad:
        x_bcn = jnp.pad(x_bcn, ((0, 0), (0, 0), (0, pad)))
    n_p = n + pad

    w = weight.astype(x.dtype)                             # bf16 weight on bf16 inputs
    if bias is None:
        bias = jnp.zeros((c,), jnp.float32)
    bias2d = bias.astype(jnp.float32).reshape(c, 1)

    tn = _pick_spatial_tile(n_p, b, c, jnp.dtype(x.dtype).itemsize)
    grid = (b, n_p // tn)

    # Note: for very large C (~1024+ in f32) one would add a K-tiled "arbitrary"
    # grid axis with an f32 VMEM accumulator so the resident (C, C) weight does
    # not eat v7x's smaller VMEM; irrelevant at the small C typical of SSE.
    y_bcn = pl.pallas_call(
        _sse_kernel,
        out_shape=jax.ShapeDtypeStruct((b, c, n_p), x.dtype),
        grid_spec=pltpu.PrefetchScalarGridSpec(
            num_scalar_prefetch=0,
            grid=grid,
            in_specs=[
                pl.BlockSpec((1, c, tn), lambda i, j: (i, 0, j)),   # x tile (streamed)
                pl.BlockSpec((c, c), lambda i, j: (0, 0)),          # W (resident)
                pl.BlockSpec((c, 1), lambda i, j: (0, 0)),          # bias (resident)
            ],
            out_specs=pl.BlockSpec((1, c, tn), lambda i, j: (i, 0, j)),
        ),
        compiler_params=pltpu.CompilerParams(
            dimension_semantics=("parallel", "parallel")),
    )(x_bcn, w, bias2d)

    if pad:
        y_bcn = y_bcn[:, :, :n]
    return y_bcn.reshape(x.shape)


def _reference_forward(x, weight, bias):
    # Pure-JAX reference mirroring the PyTorch module (1x1 conv + sigmoid gate).
    b, c = x.shape[0], x.shape[1]
    n = int(np.prod(x.shape[2:]))
    xf = x.reshape(b, c, n).astype(jnp.float32)
    y = jnp.einsum('oc,bcn->bon', weight.astype(jnp.float32), xf) + bias[None, :, None]
    return (xf * jax.nn.sigmoid(y)).reshape(x.shape).astype(x.dtype)


if __name__ == "__main__":
    key = jax.random.PRNGKey(0)
    kx, kw, kb, kx2 = jax.random.split(key, 4)

    # spatial_dims=2, in_channels=4, 16x16 spatial -> N = 256 (128-divisible path)
    b, c, h, w = 2, 4, 16, 16
    x = jax.random.normal(kx, (b, c, h, w), dtype=jnp.float32)
    # PyTorch Conv2d(C, C, kernel_size=1).weight is (C, C, 1, 1), passed squeezed.
    weight = jax.random.normal(kw, (c, c), dtype=jnp.float32) * 0.2
    bias = jax.random.normal(kb, (c,), dtype=jnp.float32) * 0.1

    out = jax.block_until_ready(sse_forward(x, weight, bias))
    ref = _reference_forward(x, weight, bias)
    assert out.shape == x.shape
    assert jnp.allclose(out, ref, atol=1e-4, rtol=1e-4)

    # spatial_dims=3 with a non-128-divisible voxel count (exercises the pad path)
    x3 = jax.random.normal(kx2, (1, c, 5, 7, 3), dtype=jnp.float32)
    out3 = jax.block_until_ready(sse_forward(x3, weight, bias))
    ref3 = _reference_forward(x3, weight, bias)
    assert out3.shape == x3.shape
    assert jnp.allclose(out3, ref3, atol=1e-4, rtol=1e-4)

    print("KERNEL_OK")
</pallas_src>

<mosaic_0001>
module attributes {stable_mosaic.version = 11 : i64} {
  func.func @_sse_kernel(%arg0: i32, %arg1: i32, %arg2: memref<1x4x128xf32, #tpu.memory_space<vmem>>, %arg3: memref<4x4xf32, #tpu.memory_space<vmem>>, %arg4: memref<4x1xf32, #tpu.memory_space<vmem>>, %arg5: memref<1x4x128xf32, #tpu.memory_space<vmem>>) attributes {dimension_semantics = [#tpu.dimension_semantics<parallel>, #tpu.dimension_semantics<parallel>], iteration_bounds = array<i64: 2, 2>, scalar_prefetch = 0 : i64, scratch_operands = 0 : i64, tpu.core_type = #tpu.core_type<tc>, window_params = [{transform_indices = @transform_0, window_bounds = array<i64: 1, 4, 128>}, {pipeline_mode = #tpu.pipeline_mode<synchronous>, transform_indices = @transform_1, window_bounds = array<i64: 4, 4>}, {pipeline_mode = #tpu.pipeline_mode<synchronous>, transform_indices = @transform_2, window_bounds = array<i64: 4, 1>}, {transform_indices = @transform_3, window_bounds = array<i64: 1, 4, 128>}]} {
    %c0 = arith.constant 0 : index
    %c0_0 = arith.constant 0 : index
    %c0_1 = arith.constant 0 : index
    %0 = vector.load %arg2[%c0, %c0_0, %c0_1] : memref<1x4x128xf32, #tpu.memory_space<vmem>>, vector<1x4x128xf32>
    %1 = vector.shape_cast %0 : vector<1x4x128xf32> to vector<4x128xf32>
    %c0_2 = arith.constant 0 : index
    %c0_3 = arith.constant 0 : index
    %2 = vector.load %arg3[%c0_2, %c0_3] : memref<4x4xf32, #tpu.memory_space<vmem>>, vector<4x4xf32>
    %cst = arith.constant dense<0.000000e+00> : vector<4x128xf32>
    %3 = tpu.matmul %2, %1, %cst {dimension_numbers = #tpu.dot_dimension_numbers<[1], [0], [0], [1], [0, 0, 1, 1], [], []>} : vector<4x4xf32>, vector<4x128xf32>, vector<4x128xf32> -> vector<4x128xf32>
    %c0_4 = arith.constant 0 : index
    %c0_5 = arith.constant 0 : index
    %4 = vector.load %arg4[%c0_4, %c0_5] : memref<4x1xf32, #tpu.memory_space<vmem>>, vector<4x1xf32>
    %5 = vector.broadcast %4 : vector<4x1xf32> to vector<4x128xf32>
    %6 = arith.addf %3, %5 : vector<4x128xf32>
    %cst_6 = arith.constant 5.000000e-01 : f32
    %7 = vector.broadcast %cst_6 : f32 to vector<4x128xf32>
    %8 = arith.mulf %6, %7 : vector<4x128xf32>
    %9 = math.tanh %8 : vector<4x128xf32>
    %cst_7 = arith.constant 1.000000e+00 : f32
    %10 = vector.broadcast %cst_7 : f32 to vector<4x128xf32>
    %11 = arith.addf %9, %10 : vector<4x128xf32>
    %cst_8 = arith.constant 5.000000e-01 : f32
    %12 = vector.broadcast %cst_8 : f32 to vector<4x128xf32>
    %13 = arith.mulf %12, %11 : vector<4x128xf32>
    %14 = arith.mulf %1, %13 : vector<4x128xf32>
    %c0_9 = arith.constant 0 : index
    %c0_10 = arith.constant 0 : index
    %c0_11 = arith.constant 0 : index
    %15 = vector.load %arg5[%c0_9, %c0_10, %c0_11] : memref<1x4x128xf32, #tpu.memory_space<vmem>>, vector<1x4x128xf32>
    %16 = vector.shape_cast %15 : vector<1x4x128xf32> to vector<4x128xf32>
    %17 = vector.shape_cast %14 : vector<4x128xf32> to vector<1x4x128xf32>
    tpu.vector_store %arg5[%c0_9, %c0_10, %c0_11], %17 {strides = array<i32>} : memref<1x4x128xf32, #tpu.memory_space<vmem>>, vector<1x4x128xf32>,
    return
  }
  func.func @transform_0(%arg0: i32, %arg1: i32) -> (i32, i32, i32) {
    %c0_i32 = arith.constant 0 : i32
    %c0_i32_0 = arith.constant 0 : i32
    return %arg0, %c0_i32, %arg1 : i32, i32, i32
  }
  func.func @transform_1(%arg0: i32, %arg1: i32) -> (i32, i32) {
    %c0_i32 = arith.constant 0 : i32
    %c0_i32_0 = arith.constant 0 : i32
    %c0_i32_1 = arith.constant 0 : i32
    return %c0_i32, %c0_i32_0 : i32, i32
  }
  func.func @transform_2(%arg0: i32, %arg1: i32) -> (i32, i32) {
    %c0_i32 = arith.constant 0 : i32
    %c0_i32_0 = arith.constant 0 : i32
    %c0_i32_1 = arith.constant 0 : i32
    return %c0_i32, %c0_i32_0 : i32, i32
  }
  func.func @transform_3(%arg0: i32, %arg1: i32) -> (i32, i32, i32) {
    %c0_i32 = arith.constant 0 : i32
    %c0_i32_0 = arith.constant 0 : i32
    return %arg0, %c0_i32, %arg1 : i32, i32, i32
  }
}

</mosaic_0001>

<bundles_post_ra>
// kernel: tpu_custom_call.1
= control target key start
LH: loop header
LB: loop body
LE: loop exit
PB: predicated region body
PF: predicated region fallthrough
CT: control target
= control target key end

     0   :  { %8 = vsyncpa [#allocation3], 0  ;;  %s864_s0 = inlined_call_operand.hbm [shape: f32[2,4,256], index: 0, kind: input, shape index: {}]   ;;  %s865_s1 = inlined_call_operand.vmem [shape: f32[4,4], index: 1, kind: input, shape index: {}]   ;;  %s866_s2 = inlined_call_operand.vmem [shape: f32[4,1], index: 2, kind: input, shape index: {}]   ;;  %s867_s3 = inlined_call_operand.hbm [shape: f32[2,4,256], index: 3, kind: output, shape index: {}]  }
   0x1   :  { %10 = vsyncpa [#allocation3 + $0x1], 0 }
   0x2   :  { %11 = vsyncpa [#allocation4], 0 }
   0x3   :  { %13 = vsyncpa [#allocation4 + $0x1], 0  ;;  %s660_s12 = smov 0   ;;  %s662_s13 = smov 0  }
   0x4   :  { %s664_s14 = smov 0   ;;  %s666_s15 = smov 0  }
   0x5   :  { %s668_s16 = smov 0   ;;  %s670_s17 = smov 0  }
   0x6   :  { %s672_s18 = smov 0   ;;  %s674_s19 = smov 0  }
   0x7 LB: > { %s397_s20 = sadd.s32 4294967295, %s633_s19   ;;  %s398_s21 = sadd.s32 4294967294, %s633_s19   ;;  %s633_s19 = sphi %s674_s19, %s19_s19   ;;  %s629_s18 = sphi %s672_s18, %s884_s18   ;;  %s625_s17 = sphi %s670_s17, %s883_s17   ;;  %s621_s16 = sphi %s668_s16, %s882_s16   ;;  %s617_s15 = sphi %s666_s15, %s881_s15   ;;  %s613_s14 = sphi %s664_s14, %s880_s14   ;;  %s609_s13 = sphi %s662_s13, %s879_s13   ;;  %s605_s12 = sphi %s660_s12, %s878_s12  }
   0x8   : > { %s28_s22 = sadd.s32 1, %s625_s17  ;;  %s31_s23 = sadd.s32 1, %s629_s18 }
   0x9   : > { %p29_p0 = scmp.ge.s32.totalorder %s28_s22, 2  ;;  %s40_s24 = sadd.s32 1, %s613_s14 }
   0xa   : > { %p47_p1 = scmp.ne.s32.totalorder %s613_s14, %s609_s13  ;;  %p48_p2 = scmp.eq.s32.totalorder %s633_s19, 0 }
   0xb   : > { %s886_s22 = smov (%p29_p0, %s28_s22), 0  ;;  %s888_s23 = smov (!%p29_p0, %s31_s23), %s629_s18 }
   0xc   : > { %s36_s25 = ssub.s32 %s625_s17, %s886_s22  ;;  %p713_p3 = por %p48_p2, %p47_p1 }
   0xd   : > { %p33_p4 = scmp.ge.s32.totalorder %s888_s23, 2  ;;  %p53_p5 = scmp.ne.s32.totalorder %s609_s13, %s605_s12 }
   0xe   : > { %p54_p6 = scmp.eq.s32.totalorder %s397_s20, 0  ;;  %p121_p7 = scmp.eq.s32.totalorder %s397_s20, 3 }
   0xf   : > { %s890_s23 = smov (%p33_p4, %s888_s23), 0  ;;  %p127_p10 = scmp.eq.s32.totalorder %s398_s21, 3 }
  0x10   : > { %p721_p8 = por %p54_p6, %p53_p5  ;;  %p725_p9 = por %p121_p7, %p47_p1 }
  0x11   : > { %s35_s29 = ssub.s32 %s629_s18, %s890_s23  ;;  %p731_p12 = por %p127_p10, %p53_p5 }
  0x12   : > { %s871_s28 = scalar_select %p725_p9, 1, 0 }
  0x13   : > { %s37_s30 = sor.u32 %s36_s25, %s35_s29  ;;  %p433_p13 = scmp.lt.s32.totalorder %s633_s19, 4 }
  0x14   : > { %p38_p11 = scmp.eq.s32.totalorder %s37_s30, 0  ;;  %s153_s5 = sand.u32 1, %s613_s14  }
  0x15   : > { %s872_s4 = scalar_select %p731_p12, 1, 0 }
  0x16   : > { %s738_s6 = scalar_select %p38_p11, %s613_s14, %s40_s24  }
  0x17   : > { %s401_s7 = sshll.u32 %s153_s5, 2  ;;  %s402_s8 = sshll.u32 %s629_s18, 1 }
  0x18   : > { %s162_s9 = sadd.s32 %s625_s17, %s402_s8  ;;  %s157_s10 = scalar_lea.vmem [#allocation2], %s401_s7 }
  0x19   : > { %s166_s11 = sshll.u32 %s157_s10, 4  ;;  %s403_s20 = sshll.u32 %s162_s9, 6  ;;  %s742_s11 = int_to_ptr.vmem [resolvable:$true] %s166_s11 }
  0x1a   : > { %s747_s29 = scalar_lea.hbm %s864_s0, %s403_s20  ;;  %p751_p0 = pnand %p433_p13, %p713_p3 }
  0x1b   : > { %s154_s30 = scalar_lea.sflag [#allocation3], %s153_s5  ;;  %s505_s7 = scalar_lea.hbm %s747_s29, 64 }
  0x1c   : > { %p506_p4 = scmp.ne.s32.totalorder %s747_s29, %s505_s7  ;;  %p507_p5 = pneg %p751_p0 }
  0x1d   : > { %s510_s9 = scalar_lea.hbm %s864_s0, 256  ;;  %p511_p3 = scmp.lt.u32.totalorder %s747_s29, %s864_s0 }
  0x1e   : > { %p508_p6 = pnand %p507_p5, %p506_p4  ;;  %p512_p10 = scmp.lt.u32.totalorder %s510_s9, %s505_s7 }
  0x1f   : > { %p514_p13 = scmp.lt.u32.totalorder %s505_s7, %s747_s29 }
  0x20   : > { %p509_p7 = pneg %p508_p6  ;;  %p513_p11 = por %p512_p10, %p511_p3 }
  0x22   : > { %p515_p1 = por %p514_p13, %p513_p11 }
  0x24   : > { %p516_p2 = pnand %p515_p1, %p509_p7 }
  0x26   : > { %519 = shalt.err (!%p516_p2)
}
  0x27   : > { %s520_s5 = scalar_lea.vmem %s742_s11, 64  ;;  %s635_s21 = smov [#allocation2]  }
  0x28   : > { %p521_p4 = scmp.ne.s32.totalorder %s742_s11, %s520_s5  ;;  %s525_s25 = sshll.u32 %s635_s21, 4  ;;  %s526_s25 = int_to_ptr.vmem [resolvable:$false] %s525_s25 }
  0x29   : > { %s527_s26 = scalar_lea.vmem %s526_s25, 128  ;;  %p528_p9 = scmp.lt.s32.totalorder %s742_s11, %s526_s25 }
  0x2a   : > { %p523_p6 = pnand %p521_p4, %p507_p5  ;;  %p529_p3 = scmp.lt.s32.totalorder %s527_s26, %s520_s5 }
  0x2c   : > { %p524_p12 = pneg %p523_p6  ;;  %p530_p10 = por %p529_p3, %p528_p9 }
  0x2e   : > { %p531_p11 = pnand %p530_p10, %p524_p12 }
  0x30   : > { %534 = shalt.err (!%p531_p11)
}
  0x31   : > { %428 = dma.hbm_to_vmem [thread:$0]  (!%p751_p0), %s747_s29, 64, %s742_s11, %s154_s30  }
  0x32   : > { %p874_p1 = scmp.lt.s32.totalorder %s633_s19, 5  ;;  %p875_p2 = scmp.ge.s32.totalorder %s633_s19, 1 }
  0x34   : > { %p172_p5 = pnand %p875_p2, %p874_p1 }
  0x35   : > { %s787_s7 = sand.u32 (!%p172_p5), 1, %s609_s13  }
  0x36   : > { %175 = sbr.rel (%p172_p5) target bundleno = 312 (0x138), region = 32  ;;  %s405_s8 = sshll.u32 (!%p172_p5), %s787_s7, 2 }
  0x37   : > { %s178_s9 = scalar_lea.sflag (!%p172_p5), [#allocation3], %s787_s7  ;;  %s181_s24 = scalar_lea.vmem (!%p172_p5), [#allocation2], %s405_s8 }
  0x3d   : > { %596 = dma.done.wait (%p721_p8), %s178_s9, 64  }
  0x3e   : > { %598 = vsyncadd (%p721_p8), %s178_s9, 4294967232  ;;  %v636_v0 = vmov 0.0   ;;  %vm637_vm0 = vmmov 0   ;;  %v638_v1 = vmov 0   ;;  %vm216_vm1 = vcmask 1043456   ;;  %s410_s27 = sshll.u32 %s621_s16, 1 }
  0x3f   : > { %416 = vmatprep.subr.mxu0 %v636_v0  ;;  %418 = vmatprep.mubr.msk.f32.mxu0 %vm637_vm0, %v636_v0  ;;  %vm212_vm2 = vcmask 31744   ;;  %v204_v2 = vld [vmem:[%s181_s24] sm:$0xf]  ;;  %s308_s20 = sadd.s32 %s617_s15, %s410_s27  ;;  %s203_s21 = scalar_lea.vmem [#allocation5], %s405_s8 }
  0x40   : > { %502 = vset.pattern.permute.xlu0 %v638_v1  ;;  %v205_v3 = vld [vmem:[%s865_s1] sm:$0xf]  ;;  %417 = vmatpush3.msk.msra.mxu0 %vm216_vm1, %v204_v2  ;;  %s411_s5 = sshll.u32 %s308_s20, 6  ;;  %s312_s25 = sshll.u32 %s203_s21, 4  ;;  %s812_s25 = int_to_ptr.vmem [resolvable:$true] %s312_s25 }
  0x41   : > { %v206_v4 = vld [vmem:[%s866_s2] sm:$0xf]  ;;  %419 = vmatmul.mubr.msk.f32.vlgmr.msra.gmra.mrb[0].mxu0 %vm212_vm2, %v205_v3  ;;  %s810_s24 = scalar_lea.hbm %s867_s3, %s411_s5  ;;  %s297_s15 = scalar_lea.sflag [#allocation4], %s787_s7 }
  0x42   : > { %209 = vperm.xlu0 %502, %v206_v4   ;;  %s535_s16 = scalar_lea.vmem %s812_s25, 64  ;;  %p876_p9 = scmp.ne.s32.totalorder %s871_s28, 0 }
  0x43   : > { %p536_p8 = scmp.ne.s32.totalorder %s812_s25, %s535_s16  ;;  %s639_s8 = smov [#allocation5]  }
  0x44   : > { %s539_s11 = sshll.u32 %s639_s8, 4  ;;  %s540_s11 = int_to_ptr.vmem [resolvable:$false] %s539_s11 }
  0x45   : > { %p537_p12 = pnand %p536_p8, %p876_p9  ;;  %s541_s29 = scalar_lea.vmem %s540_s11, 128 }
  0x46   : > { %p542_p7 = scmp.lt.s32.totalorder %s812_s25, %s540_s11  ;;  %p543_p13 = scmp.lt.s32.totalorder %s541_s29, %s535_s16 }
  0x47   : > { %p538_p0 = pneg %p537_p12 }
  0x48   : > { %p544_p4 = por %p543_p13, %p542_p7 }
  0x4a   : > { %p545_p6 = pnand %p544_p4, %p538_p0 }
  0xc1   : > { %v210_v5 = vpop.permute.xlu0 %209 }
 0x114   : > { %v286_v6 = vpop.f32.mrb[0].mxu0 }
 0x115   : > { %v287_v7 = vadd.f32 %v286_v6, %v210_v5  ;;  %v420_v8 = vpop.f32.mrb[1].mxu0 }
 0x117   : > { %v290_v9 = vmul.f32 0.5, %v287_v7 }
 0x119   : > { %503 = vtanh.f32 %v290_v9 }
 0x123   : > { %v504_v10 = vpop.eup %503 }
 0x124   : > { %v292_v11 = vadd.f32 1.0, %v504_v10 }
 0x126   : > { %v293_v12 = vmul.f32 0.5, %v292_v11 }
 0x128   : > { %v294_v13 = vmul.f32 %v293_v12, %v204_v2 }
 0x12a   : > { %295 = vst [vmem:[%s203_s21] sm:$0xf] %v294_v13 }
 0x12b   : > { %548 = shalt.err (!%p545_p6)
}
 0x12c   : > { %s549_s7 = scalar_lea.hbm %s810_s24, 64  ;;  %s553_s27 = scalar_lea.hbm %s867_s3, 256 }
 0x12d   : > { %p550_p3 = scmp.ne.s32.totalorder %s810_s24, %s549_s7  ;;  %p554_p1 = scmp.lt.u32.totalorder %s810_s24, %s867_s3 }
 0x12e   : > { %p555_p2 = scmp.lt.u32.totalorder %s553_s27, %s549_s7  ;;  %p557_p8 = scmp.lt.u32.totalorder %s549_s7, %s810_s24 }
 0x12f   : > { %p551_p10 = pnand %p550_p3, %p876_p9 }
 0x130   : > { %p556_p5 = por %p555_p2, %p554_p1 }
 0x131   : > { %p552_p11 = pneg %p551_p10 }
 0x132   : > { %p558_p12 = por %p557_p8, %p556_p5 }
 0x134   : > { %p559_p0 = pnand %p558_p12, %p552_p11 }
 0x136   : > { %562 = shalt.err (!%p559_p0)
}
 0x137   : > { %423 = dma.vmem_to_hbm [thread:$0]  (%p876_p9), %s812_s25, 64, %s810_s24, %s297_s15  }
 0x138 PF: > { %p434_p7 = scmp.ge.s32.totalorder %s633_s19, 2  ;;  %s324_s21 = sand.u32 1, %s605_s12  }
 0x139   : > { %p877_p13 = scmp.ne.s32.totalorder %s872_s4, 0  ;;  %s325_s26 = scalar_lea.sflag [#allocation4], %s324_s21 }
 0x13b   : > { %p430_p4 = pnand %p434_p7, %p877_p13 }
 0x13d   : > { %600 = dma.done.wait (!%p430_p4), %s325_s26, 64  }
 0x13e   : > { %602 = vsyncadd (!%p430_p4), %s325_s26, 4294967232  ;;  %s19_s19 = sadd.s32 1, %s633_s19   ;;  %s878_s12 = smov %s609_s13 }
 0x13f   : > { %p16_p6 = scmp.ge.s32.totalorder %s19_s19, 6   ;;  %s879_s13 = smov %s613_s14 }
 0x140   : > { %s880_s14 = smov %s738_s6  ;;  %s881_s15 = smov %s625_s17 }
 0x141   : > { %s882_s16 = smov %s629_s18  ;;  %s883_s17 = smov %s886_s22 }
 0x142   : > { %s884_s18 = smov %s890_s23  ;;  %18 = sbr.rel (!%p16_p6) target bundleno = 7 (0x7), region = 77 }
 0x149   :  { %330 = vsyncpa [#allocation3], 1 }
 0x14a   :  { %332 = vsyncpa [#allocation3 + $0x1], 1 }
 0x14b   :  { %333 = vsyncpa [#allocation4], 1 }
 0x14c   :  { %335 = vsyncpa [#allocation4 + $0x1], 1 }

</bundles_post_ra>
